<compile_context>
chip_gen: v6e
topology: v6e:2x2x1
jax: 0.10.0
libtpu: 0.0.40
codegen_flags: <defaults>
</compile_context>

<pallas_src>
import jax
import jax.numpy as jnp
from jax.experimental import pallas as pl
from jax.experimental.pallas import tpu as pltpu

# ----------------------------- model dims ----------------------------------
B, C, H, W = 2, 4, 16, 16          # image  (NCHW)
PATCH = 4                          # patch size
NP = (H // PATCH) * (W // PATCH)   # 16 patches per image
DP = C * PATCH * PATCH             # 64  patch feature dim
HIDDEN = 32                        # visual-encoder hidden / pooler dim
PROJ = 32                          # projection dim
OUT = 1                            # fc output (single logit)
EPS = 1e-5

R = B * NP                         # 32 patch rows in the batch slab
OUT_ROWS = 8                       # sublane-padded output rows  (>= B)
OUT_LANES = 128                    # lane-dense output width (logit in col 0)


# ------------------------------ kernel --------------------------------------
def aigc_detector_kernel(xp_ref, we_ref, be_ref, wf_ref, bf_ref, out_ref):
    """Single-invocation kernel over the whole batch.

    xp_ref : (B*NP, DP)         all patches (bf16 on the perf path, f32 otherwise)
    we_ref : (DP, HIDDEN)       patch-embedding weight (same dtype as xp_ref)
    be_ref : (1, HIDDEN)  f32   patch-embedding bias
    wf_ref : (HIDDEN, 128) f32  folded gamma*(proj@fc_w) in column 0, zeros elsewhere
    bf_ref : (1, 1)       f32   SMEM scalar: beta@proj@fc_w + fc_b
    out_ref: (8, 128)     f32   lane-dense output slab; logit at [:B, 0]
    """
    # --- synthetic visual encoder: patch embedding on the MXU (f32 accumulate)
    h = jnp.dot(xp_ref[...], we_ref[...], preferred_element_type=jnp.float32)
    h = h + be_ref[...]                                          # (R, HIDDEN) f32

    # --- LayerNorm over the hidden dim, two-pass variance, stats on the MXU.
    # `x @ ones(H, H)` puts the row sum in every lane => reduce + lane
    # broadcast in a single (cheap, otherwise idle) vmatmul, no XLU use.
    ones_hh = jnp.ones((HIDDEN, HIDDEN), jnp.float32)
    inv_h = 1.0 / HIDDEN
    mu = jnp.dot(h, ones_hh, preferred_element_type=jnp.float32) * inv_h
    d = h - mu
    var = jnp.dot(d * d, ones_hh, preferred_element_type=jnp.float32) * inv_h
    hn = d * jax.lax.rsqrt(var + EPS)                            # (R, HIDDEN) f32

    # --- per-image mean-pool ('pooler_output', affine folded downstream) as an
    # MXU matmul with a block-diagonal averaging matrix (rows >= B are zero,
    # which sublane-pads the output for an unmasked full-block store).
    row = jax.lax.broadcasted_iota(jnp.int32, (OUT_ROWS, R), 0)
    col = jax.lax.broadcasted_iota(jnp.int32, (OUT_ROWS, R), 1)
    in_seg = (col >= row * NP) & (col < (row + 1) * NP)
    pool = jnp.where(in_seg, 1.0 / NP, 0.0).astype(jnp.float32)  # (8, R)
    pooled = jnp.dot(pool, hn, preferred_element_type=jnp.float32)  # (8, HIDDEN)

    # --- folded (gamma, beta, proj, fc): lane-padded weight column keeps the
    # final reduce on the MXU and the store lane-dense + unmasked.
    pred = jnp.dot(pooled, wf_ref[...], preferred_element_type=jnp.float32)
    out_ref[...] = pred + bf_ref[0, 0]                           # (8, 128) store


# ------------------------------ wrapper --------------------------------------
def aigc_detector(image_nchw, params, *, matmul_dtype=jnp.bfloat16):
    """image_nchw: (B, C, H, W) float32.  Returns (B, 1) f32 logits."""
    b = image_nchw.shape[0]
    assert b == B and b <= OUT_ROWS

    # NCHW -> (B*NP, DP) patch slab.
    # TODO(synk): fold this relayout into the kernel's DMA pattern at realistic
    # image sizes (see header); at 4 KiB per image it is irrelevant.
    xp = image_nchw.reshape(b, C, H // PATCH, PATCH, W // PATCH, PATCH)
    xp = xp.transpose(0, 2, 4, 1, 3, 5).reshape(b * NP, DP)

    # Fold everything after the LayerNorm normalization (gamma/beta affine,
    # mean-pool commutes, proj, fc) into one (HIDDEN,) vector + scalar bias.
    # NOTE: this fold is only valid because OUT == 1; with OUT > 1 keep a
    # (HIDDEN, OUT) matrix and an (OUT,) bias.
    assert OUT == 1
    pw = params["proj"] @ params["fc_w"]                               # (HIDDEN, 1)
    w_final = params["ln_gamma"].reshape(HIDDEN) * pw[:, 0]           # (HIDDEN,)
    b_final = (params["ln_beta"].reshape(1, HIDDEN) @ pw)[0, 0] \
        + params["fc_b"][0, 0]                                         # scalar

    # Lane-dense final weight: logit weights in column 0 of a 128-wide slab.
    w_final_pad = jnp.zeros((HIDDEN, OUT_LANES), jnp.float32)
    w_final_pad = w_final_pad.at[:, 0].set(w_final.astype(jnp.float32))
    b_final_smem = jnp.full((1, 1), b_final, jnp.float32)

    vmem = pltpu.MemorySpace.VMEM
    smem = pltpu.MemorySpace.SMEM
    out = pl.pallas_call(
        aigc_detector_kernel,
        out_shape=jax.ShapeDtypeStruct((OUT_ROWS, OUT_LANES), jnp.float32),
        in_specs=[pl.BlockSpec(memory_space=vmem),    # patches (B*NP, DP)
                  pl.BlockSpec(memory_space=vmem),    # w_embed (DP, HIDDEN)
                  pl.BlockSpec(memory_space=vmem),    # b_embed (1, HIDDEN)
                  pl.BlockSpec(memory_space=vmem),    # w_final_pad (HIDDEN, 128)
                  pl.BlockSpec(memory_space=smem)],   # b_final (1, 1) scalar
        out_specs=pl.BlockSpec(memory_space=vmem),
    )(xp.astype(matmul_dtype),
      params["w_embed"].astype(matmul_dtype),
      params["b_embed"].reshape(1, HIDDEN).astype(jnp.float32),
      w_final_pad,
      b_final_smem)

    return out[:b, :OUT]                                               # (B, 1)


# ------------------------- deterministic params ------------------------------
def init_params(key):
    ks = jax.random.split(key, 5)
    return {
        # TODO(synk): full HF visual_encoder (attention stack) replaced by a
        # synthetic patch-embed + LayerNorm + mean-pool pooler.
        "w_embed": (jax.random.normal(ks[0], (DP, HIDDEN), jnp.float32)
                    * (1.0 / jnp.sqrt(DP))),
        "b_embed": jnp.zeros((1, HIDDEN), jnp.float32),
        "ln_gamma": jnp.ones((1, HIDDEN), jnp.float32),
        "ln_beta": jnp.zeros((1, HIDDEN), jnp.float32),
        "proj": (jax.random.normal(ks[1], (HIDDEN, PROJ), jnp.float32)
                 * (1.0 / jnp.sqrt(HIDDEN))),
        "fc_w": (jax.random.normal(ks[2], (PROJ, OUT), jnp.float32)
                 * (1.0 / jnp.sqrt(PROJ))),
        "fc_b": jnp.zeros((1, OUT), jnp.float32),
    }


# ---------------------------- reference (plain JAX, f32) ----------------------
def reference(image_nchw, p):
    b = image_nchw.shape[0]
    xp = image_nchw.reshape(b, C, H // PATCH, PATCH, W // PATCH, PATCH)
    xp = xp.transpose(0, 2, 4, 1, 3, 5).reshape(b, NP, DP).astype(jnp.float32)
    h = xp @ p["w_embed"] + p["b_embed"]
    mu = h.mean(-1, keepdims=True)
    var = ((h - mu) ** 2).mean(-1, keepdims=True)
    hn = (h - mu) * jax.lax.rsqrt(var + EPS) * p["ln_gamma"] + p["ln_beta"]
    pooled = hn.mean(axis=1)                      # (B, HIDDEN) pooler_output
    feature = pooled @ p["proj"]                  # @ self.proj
    return feature @ p["fc_w"] + p["fc_b"]        # self.fc(feature)


if __name__ == "__main__":
    key = jax.random.PRNGKey(0)
    k_img, k_par = jax.random.split(key)
    image = jax.random.normal(k_img, (B, C, H, W), jnp.float32)
    params = init_params(k_par)

    ref = reference(image, params)

    # f32-operand path: validates the kernel structure against the f32 spec.
    pred_f32 = jax.block_until_ready(
        aigc_detector(image, params, matmul_dtype=jnp.float32))
    assert pred_f32.shape == (B, OUT)
    assert jnp.allclose(pred_f32, ref, atol=1e-4, rtol=1e-4), (pred_f32, ref)

    # bf16 MXU-operand path (default / perf path). Tolerance re-derived for
    # bf16 operand rounding of the K=64 patch-embed matmul (~2^-8 relative per
    # operand -> a few 1e-3 on the logit); accumulation stays f32.
    pred = jax.block_until_ready(aigc_detector(image, params))
    assert pred.shape == (B, OUT)
    assert jnp.allclose(pred, ref, atol=2e-2, rtol=2e-2), (pred, ref)

    print("KERNEL_OK")
</pallas_src>

<mosaic_0001>
module attributes {stable_mosaic.version = 11 : i64} {
  func.func @aigc_detector_kernel(%arg0: memref<32x64xf32, #tpu.memory_space<vmem>>, %arg1: memref<64x32xf32, #tpu.memory_space<vmem>>, %arg2: memref<1x32xf32, #tpu.memory_space<vmem>>, %arg3: memref<32x128xf32, #tpu.memory_space<vmem>>, %arg4: memref<1x1xf32, #tpu.memory_space<smem>>, %arg5: memref<8x128xf32, #tpu.memory_space<vmem>>) attributes {dimension_semantics = [], scalar_prefetch = 0 : i64, scratch_operands = 0 : i64, tpu.core_type = #tpu.core_type<tc>} {
    %c0 = arith.constant 0 : index
    %c0_0 = arith.constant 0 : index
    %0 = vector.load %arg0[%c0, %c0_0] : memref<32x64xf32, #tpu.memory_space<vmem>>, vector<32x64xf32>
    %c0_1 = arith.constant 0 : index
    %c0_2 = arith.constant 0 : index
    %1 = vector.load %arg1[%c0_1, %c0_2] : memref<64x32xf32, #tpu.memory_space<vmem>>, vector<64x32xf32>
    %cst = arith.constant dense<0.000000e+00> : vector<32x32xf32>
    %2 = tpu.matmul %0, %1, %cst {dimension_numbers = #tpu.dot_dimension_numbers<[1], [0], [0], [1], [0, 0, 1, 1], [], []>} : vector<32x64xf32>, vector<64x32xf32>, vector<32x32xf32> -> vector<32x32xf32>
    %c0_3 = arith.constant 0 : index
    %c0_4 = arith.constant 0 : index
    %3 = vector.load %arg2[%c0_3, %c0_4] : memref<1x32xf32, #tpu.memory_space<vmem>>, vector<1x32xf32>
    %4 = vector.broadcast %3 : vector<1x32xf32> to vector<32x32xf32>
    %5 = arith.addf %2, %4 : vector<32x32xf32>
    %cst_5 = arith.constant 1.000000e+00 : f32
    %6 = vector.broadcast %cst_5 : f32 to vector<32x32xf32>
    %cst_6 = arith.constant dense<0.000000e+00> : vector<32x32xf32>
    %7 = tpu.matmul %5, %6, %cst_6 {dimension_numbers = #tpu.dot_dimension_numbers<[1], [0], [0], [1], [0, 0, 1, 1], [], []>} : vector<32x32xf32>, vector<32x32xf32>, vector<32x32xf32> -> vector<32x32xf32>
    %cst_7 = arith.constant 3.125000e-02 : f32
    %8 = vector.broadcast %cst_7 : f32 to vector<32x32xf32>
    %9 = arith.mulf %7, %8 : vector<32x32xf32>
    %10 = arith.subf %5, %9 : vector<32x32xf32>
    %11 = arith.mulf %10, %10 : vector<32x32xf32>
    %cst_8 = arith.constant dense<0.000000e+00> : vector<32x32xf32>
    %12 = tpu.matmul %11, %6, %cst_8 {dimension_numbers = #tpu.dot_dimension_numbers<[1], [0], [0], [1], [0, 0, 1, 1], [], []>} : vector<32x32xf32>, vector<32x32xf32>, vector<32x32xf32> -> vector<32x32xf32>
    %cst_9 = arith.constant 3.125000e-02 : f32
    %13 = vector.broadcast %cst_9 : f32 to vector<32x32xf32>
    %14 = arith.mulf %12, %13 : vector<32x32xf32>
    %cst_10 = arith.constant 9.99999974E-6 : f32
    %15 = vector.broadcast %cst_10 : f32 to vector<32x32xf32>
    %16 = arith.addf %14, %15 : vector<32x32xf32>
    %17 = math.rsqrt %16 : vector<32x32xf32>
    %18 = arith.mulf %10, %17 : vector<32x32xf32>
    %19 = tpu.iota {dimensions = array<i32: 0>} : vector<8x32xi32>
    %20 = tpu.iota {dimensions = array<i32: 1>} : vector<8x32xi32>
    %c16_i32 = arith.constant 16 : i32
    %21 = vector.broadcast %c16_i32 : i32 to vector<8x32xi32>
    %22 = arith.muli %19, %21 : vector<8x32xi32>
    %23 = arith.cmpi sge, %20, %22 : vector<8x32xi32>
    %c1_i32 = arith.constant 1 : i32
    %24 = vector.broadcast %c1_i32 : i32 to vector<8x32xi32>
    %25 = arith.addi %19, %24 : vector<8x32xi32>
    %c16_i32_11 = arith.constant 16 : i32
    %26 = vector.broadcast %c16_i32_11 : i32 to vector<8x32xi32>
    %27 = arith.muli %25, %26 : vector<8x32xi32>
    %28 = arith.cmpi slt, %20, %27 : vector<8x32xi32>
    %29 = arith.andi %23, %28 : vector<8x32xi1>
    %cst_12 = arith.constant 6.250000e-02 : f32
    %cst_13 = arith.constant 0.000000e+00 : f32
    %30 = vector.broadcast %cst_12 : f32 to vector<8x32xf32>
    %31 = vector.broadcast %cst_13 : f32 to vector<8x32xf32>
    %32 = arith.select %29, %30, %31 : vector<8x32xi1>, vector<8x32xf32>
    %cst_14 = arith.constant dense<0.000000e+00> : vector<8x32xf32>
    %33 = tpu.matmul %32, %18, %cst_14 {dimension_numbers = #tpu.dot_dimension_numbers<[1], [0], [0], [1], [0, 0, 1, 1], [], []>} : vector<8x32xf32>, vector<32x32xf32>, vector<8x32xf32> -> vector<8x32xf32>
    %c0_15 = arith.constant 0 : index
    %c0_16 = arith.constant 0 : index
    %34 = vector.load %arg3[%c0_15, %c0_16] : memref<32x128xf32, #tpu.memory_space<vmem>>, vector<32x128xf32>
    %cst_17 = arith.constant dense<0.000000e+00> : vector<8x128xf32>
    %35 = tpu.matmul %33, %34, %cst_17 {dimension_numbers = #tpu.dot_dimension_numbers<[1], [0], [0], [1], [0, 0, 1, 1], [], []>} : vector<8x32xf32>, vector<32x128xf32>, vector<8x128xf32> -> vector<8x128xf32>
    %c0_18 = arith.constant 0 : index
    %c0_19 = arith.constant 0 : index
    %36 = memref.load %arg4[%c0_18, %c0_19] : memref<1x1xf32, #tpu.memory_space<smem>>
    %37 = vector.broadcast %36 : f32 to vector<8x128xf32>
    %38 = arith.addf %35, %37 : vector<8x128xf32>
    %c0_20 = arith.constant 0 : index
    %c0_21 = arith.constant 0 : index
    %39 = vector.load %arg5[%c0_20, %c0_21] : memref<8x128xf32, #tpu.memory_space<vmem>>, vector<8x128xf32>
    tpu.vector_store %arg5[%c0_20, %c0_21], %38 {strides = array<i32>} : memref<8x128xf32, #tpu.memory_space<vmem>>, vector<8x128xf32>,
    return
  }
}

</mosaic_0001>

<bundles_post_ra>
// kernel: tpu_custom_call.1
= control target key start
LH: loop header
LB: loop body
LE: loop exit
PB: predicated region body
PF: predicated region fallthrough
CT: control target
= control target key end

     0   :  { %vm41_vm0 = vcmask 523264   ;;  %v699_v2 = vmov 1.0   ;;  %s814_s0 = inlined_call_operand.vmem [shape: f32[32,64], index: 0, kind: input, shape index: {}]   ;;  %s815_s1 = inlined_call_operand.vmem [shape: f32[64,32], index: 1, kind: input, shape index: {}]   ;;  %s816_s2 = inlined_call_operand.vmem [shape: f32[1,32], index: 2, kind: input, shape index: {}]   ;;  %s817_s3 = inlined_call_operand.vmem [shape: f32[32,128], index: 3, kind: input, shape index: {}]   ;;  %s818_s4 = inlined_call_operand.<no memory space> [shape: f32[1,1], index: 4, kind: input, shape index: {}]   ;;  %s819_s5 = inlined_call_operand.hbm [shape: f32[8,128], index: 5, kind: output, shape index: {}]  }
   0x1   :  { %v33_v0 = vld [vmem:[%s815_s1 + $0x38] sm:$0xff]  ;;  %v32_v1 = vld [vmem:[%s815_s1 + $0x30] sm:$0xff]  ;;  %615 = vmatprep.subr.mxu1 %v699_v2  ;;  %v31_v3 = vld [vmem:[%s815_s1 + $0x28] sm:$0xff] }
   0x2   :  { %593 = vmatprep.subr.mxu0 %v33_v0  ;;  %v22_v4 = vld [vmem:[%s814_s0] sm:$0xff]  ;;  %616 = vmatpush3.msra.mxu1 %v699_v2 }
   0x3   :  { %594 = vmatpush3.msra.mxu0 %v33_v0  ;;  %609 = vmatprep.mubr.msk.f32.mxu0 %vm41_vm0, %v22_v4  ;;  %v30_v5 = vld [vmem:[%s815_s1 + $0x20] sm:$0xff] }
   0x4   :  { %595 = vmatprep.subr.mxu0 %v32_v1  ;;  %617 = vmatprep.subr.mxu1 %v699_v2 }
   0x5   :  { %596 = vmatpush3.msra.mxu0 %v32_v1 }
   0x6   :  { %11 = vsyncpa [#allocation4], 0  ;;  %597 = vmatprep.subr.mxu0 %v31_v3  ;;  %618 = vmatpush3.msra.mxu1 %v699_v2  ;;  %v29_v6 = vld [vmem:[%s815_s1 + $0x18] sm:$0xff]  ;;  %v28_v7 = vld [vmem:[%s815_s1 + $0x10] sm:$0xff]  ;;  %vm139_vm1 = vcmask 261120   ;;  %v700_v38 = vmov 0.0   ;;  %v362_v52 = vlaneseq }
   0x7   :  { %598 = vmatpush3.msra.mxu0 %v31_v3  ;;  %619 = vmatprep.subr.mxu1 %v699_v2  ;;  %v27_v8 = vld [vmem:[%s815_s1 + $0x8] sm:$0xff]  ;;  %v26_v9 = vld [vmem:[%s815_s1] sm:$0xff]  ;;  %v24_v11 = vld [vmem:[%s814_s0 + $0x10] sm:$0xff]  ;;  %vm701_vm2 = vmmov 0   ;;  %s702_s26 = smov [#allocation3]  }
   0x8   :  { %599 = vmatprep.subr.mxu0 %v30_v5  ;;  %620 = vmatpush3.msra.mxu1 %v699_v2  ;;  %v23_v10 = vld [vmem:[%s814_s0 + $0x8] sm:$0xff]  ;;  %v25_v12 = vld [vmem:[%s814_s0 + $0x18] sm:$0xff]  ;;  %v540_v14 = vld [vmem:[%s816_s2] ss:$0 sm:$0xff]  ;;  %v363_v55 = vshrl.u32 %v362_v52, 7  ;;  %v365_v57 = vand.u32 127, %v362_v52 }
   0x9   :  { %600 = vmatpush3.msra.mxu0 %v30_v5  ;;  %621 = vmatprep.subr.mxu1 %v699_v2  ;;  %v449_v39 = vld [vmem:[%s817_s3 + $0x18] sm:$0xff]  ;;  %v448_v40 = vld [vmem:[%s817_s3 + $0x10] sm:$0xff]  ;;  %v447_v41 = vld [vmem:[%s817_s3 + $0x8] sm:$0xff]  ;;  %s532_s27 = sshll.u32 %s702_s26, 4  ;;  %s533_s27 = int_to_ptr.vmem [resolvable:$true] %s532_s27 }
   0xa   :  { %601 = vmatprep.subr.mxu0 %v29_v6  ;;  %622 = vmatpush3.msra.mxu1 %v699_v2  ;;  %v368_v56 = vadd.s32 1, %v363_v55  ;;  %v366_v58 = vmul.u32 16, %v363_v55  ;;  %v446_v5 = vld [vmem:[%s817_s3] sm:$0xff]  ;;  %s677_s28 = scalar_lea.vmem %s533_s27, 128  ;;  %p682_p1 = scmp.lt.s32.totalorder %s533_s27, %s533_s27 }
   0xb   :  { %602 = vmatpush3.msra.mxu0 %v29_v6  ;;  %629 = vmatprep.subr.mxu1 %v699_v2  ;;  %p678_p0 = scmp.ne.s32.totalorder %s533_s27, %s677_s28  ;;  %p683_p2 = scmp.lt.s32.totalorder %s677_s28, %s677_s28 }
   0xc   :  { %603 = vmatprep.subr.mxu0 %v28_v7  ;;  %v369_v59 = vmul.u32 16, %v368_v56  ;;  %vm367_vm3 = vcmp.ge.s32.totalorder %v365_v57, %v366_v58 }
   0xd   :  { %604 = vmatpush3.msra.mxu0 %v28_v7  ;;  %p684_p3 = por %p683_p2, %p682_p1 }
   0xe   :  { %605 = vmatprep.subr.mxu0 %v27_v8  ;;  %vm370_vm4 = vcmp.lt.s32.totalorder %v365_v57, %v369_v59 }
   0xf   :  { %606 = vmatpush3.msra.mxu0 %v27_v8  ;;  %vm371_vm5 = vmand %vm367_vm3, %vm370_vm4  ;;  %v451_v8 = vstv %s818_s4  ;;  %p685_p4 = pnand %p684_p3, %p678_p0 }
  0x10   :  { %607 = vmatprep.subr.mxu0 %v26_v9  ;;  %v372_v4 = vsel %vm371_vm5, 0.0625, %v700_v38 }
  0x11   :  { %608 = vmatpush3.msra.mxu0 %v26_v9 }
  0x12   :  { %610 = vmatmul.mubr.msk.f32.vlgmr.msra.gmra.mxu0 %vm41_vm0, %v23_v10  ;;  %643 = vmatprep.subr.mxu0 %v700_v38 }
  0x13   :  { %612 = vmatprep.mubr.msk.f32.mxu0 %vm41_vm0, %v24_v11 }
  0x16   :  { %613 = vmatmul.mubr.msk.f32.gmra.mxu0 %vm41_vm0, %v25_v12 }
  0x17   :  { %651 = vmatprep.mubr.msk.f32.mxu0 %vm701_vm2, %v700_v38 }
  0xd2   :  { %v611_v13 = vpop.f32.mrf.mxu0 }
  0xd3   :  { %v126_v17 = vadd.f32 %v611_v13, %v540_v14 }
  0xd4   :  { %v120_v15 = vpop.f32.mrf.mxu0 }
  0xd5   :  { %v121_v16 = vadd.f32 %v540_v14, %v120_v15 }
  0xd6   :  { %v614_v18 = vpop.f32.mrf.mxu0 }
  0xd7   :  { %623 = vmatprep.mubr.msk.f32.mxu1 %vm139_vm1, %v121_v16  ;;  %v136_v21 = vadd.f32 %v614_v18, %v540_v14 }
  0xd8   :  { %v130_v19 = vpop.f32.mrf.mxu0  ;;  %624 = vmatmul.mubr.msk.f32.vlgmr.msra.gmra.mxu1 %vm139_vm1, %v126_v17 }
  0xd9   :  { %v131_v20 = vadd.f32 %v540_v14, %v130_v19  ;;  %630 = vmatpush3.msra.mxu1 %v699_v2 }
  0xda   :  { %631 = vmatprep.subr.mxu1 %v699_v2 }
  0xdb   :  { %626 = vmatprep.mubr.msk.f32.mxu1 %vm139_vm1, %v131_v20  ;;  %632 = vmatpush3.msra.mxu1 %v699_v2 }
  0xdc   :  { %627 = vmatmul.mubr.msk.f32.gmra.mxu1 %vm139_vm1, %v136_v21  ;;  %633 = vmatprep.subr.mxu1 %v699_v2 }
  0xdd   :  { %634 = vmatpush3.msra.mxu1 %v699_v2 }
  0xde   :  { %635 = vmatprep.subr.mxu1 %v699_v2 }
  0xdf   :  { %636 = vmatpush3.msra.mxu1 %v699_v2 }
  0xe0   :  { %654 = vmatprep.subr.mxu1 %v700_v38 }
 0x198   :  { %v625_v22 = vpop.f32.mrf.mxu1 }
 0x199   :  { %v238_v23 = vmul.f32 0.03125, %v625_v22 }
 0x19a   :  { %v218_v24 = vpop.f32.mrf.mxu1 }
 0x19b   :  { %v237_v25 = vmul.f32 0.03125, %v218_v24  ;;  %v780_v26 = vsub.f32 %v126_v17, %v238_v23 }
 0x19c   :  { %v628_v27 = vpop.f32.mrf.mxu1 }
 0x19d   :  { %v782_v28 = vsub.f32 %v121_v16, %v237_v25  ;;  %v240_v29 = vmul.f32 0.03125, %v628_v27  ;;  %v246_v33 = vmul.f32 %v780_v26, %v780_v26 }
 0x19e   :  { %v228_v30 = vpop.f32.mrf.mxu1 }
 0x19f   :  { %v245_v31 = vmul.f32 %v782_v28, %v782_v28  ;;  %v239_v32 = vmul.f32 0.03125, %v228_v30  ;;  %v244_v34 = vsub.f32 %v136_v21, %v240_v29 }
 0x1a1   :  { %v243_v35 = vsub.f32 %v131_v20, %v239_v32  ;;  %637 = vmatprep.mubr.msk.f32.mxu1 %vm139_vm1, %v245_v31  ;;  %v248_v37 = vmul.f32 %v244_v34, %v244_v34 }
 0x1a2   :  { %638 = vmatmul.mubr.msk.f32.vlgmr.msra.gmra.mxu1 %vm139_vm1, %v246_v33 }
 0x1a3   :  { %v247_v36 = vmul.f32 %v243_v35, %v243_v35  ;;  %655 = vmatpush3.msra.mxu1 %v449_v39 }
 0x1a4   :  { %656 = vmatprep.subr.mxu1 %v700_v38 }
 0x1a5   :  { %640 = vmatprep.mubr.msk.f32.mxu1 %vm139_vm1, %v247_v36  ;;  %657 = vmatpush3.msra.mxu1 %v448_v40 }
 0x1a6   :  { %641 = vmatmul.mubr.msk.f32.gmra.mxu1 %vm139_vm1, %v248_v37  ;;  %658 = vmatprep.subr.mxu1 %v700_v38 }
 0x1a7   :  { %662 = vmatprep.mubr.msk.f32.mxu1 %vm701_vm2, %v700_v38  ;;  %659 = vmatpush3.msra.mxu1 %v447_v41 }
 0x1a8   :  { %660 = vmatprep.subr.mxu1 %v700_v38 }
 0x1a9   :  { %661 = vmatpush3.msra.mxu1 %v446_v5 }
 0x262   :  { %v639_v42 = vpop.f32.mrf.mxu1 }
 0x263   :  { %v347_v43 = vmul.f32 0.03125, %v639_v42 }
 0x264   :  { %v327_v44 = vpop.f32.mrf.mxu1 }
 0x265   :  { %v346_v46 = vmul.f32 0.03125, %v327_v44  ;;  %v351_v48 = vadd.f32 1e-05, %v347_v43 }
 0x266   :  { %v642_v45 = vpop.f32.mrf.mxu1 }
 0x267   :  { %v349_v47 = vmul.f32 0.03125, %v642_v45  ;;  %v350_v53 = vadd.f32 1e-05, %v346_v46 }
 0x268   :  { %v337_v49 = vpop.f32.mrf.mxu1 }
 0x269   :  { %v353_v50 = vadd.f32 1e-05, %v349_v47  ;;  %v348_v51 = vmul.f32 0.03125, %v337_v49 }
 0x26b   :  { %669 = vrsqrt.f32 %v353_v50  ;;  %v352_v54 = vadd.f32 1e-05, %v348_v51 }
 0x26c   :  { %671 = vrsqrt.f32 %v351_v48 }
 0x26d   :  { %673 = vrsqrt.f32 %v352_v54 }
 0x26e   :  { %675 = vrsqrt.f32 %v350_v53 }
 0x278   :  { %v670_v60 = vpop.eup %669 }
 0x279   :  { %v672_v61 = vpop.eup %671  ;;  %v361_v62 = vmul.f32 %v670_v60, %v244_v34 }
 0x27a   :  { %v674_v63 = vpop.eup %673  ;;  %v359_v2 = vmul.f32 %v672_v61, %v780_v26 }
 0x27b   :  { %644 = vmatpush3.msra.mxu0 %v361_v62  ;;  %v360_v0 = vmul.f32 %v674_v63, %v243_v35  ;;  %v676_v1 = vpop.eup %675 }
 0x27c   :  { %645 = vmatprep.subr.mxu0 %v700_v38  ;;  %v358_v3 = vmul.f32 %v676_v1, %v782_v28 }
 0x27d   :  { %646 = vmatpush3.msra.mxu0 %v360_v0 }
 0x27e   :  { %647 = vmatprep.subr.mxu0 %v700_v38 }
 0x27f   :  { %648 = vmatpush3.msra.mxu0 %v359_v2 }
 0x280   :  { %649 = vmatprep.subr.mxu0 %v700_v38 }
 0x281   :  { %650 = vmatpush3.msra.mxu0 %v358_v3 }
 0x282   :  { %652 = vmatmul.mubr.msk.f32.vlgmr.msra.gmra.mxu0 %vm139_vm1, %v372_v4 }
 0x342   :  { %v442_v6 = vpop.f32.mrf.mxu0 }
 0x343   :  { %663 = vmatmul.mubr.msk.f32.vlgmr.msra.gmra.mxu1 %vm139_vm1, %v442_v6 }
 0x344   :  { %v653_v7 = vpop.f32.mrf.mxu0 }
 0x403   :  { %v521_v9 = vpop.f32.mrf.mxu1 }
 0x404   :  { %v522_v10 = vadd.f32 %v521_v9, %v451_v8 }
 0x405   :  { %v664_v11 = vpop.f32.mrf.mxu1 }
 0x406   :  { %525 = vst [vmem:[#allocation3] sm:$0xff] %v522_v10 }
 0x407   :  { %688 = shalt.err (!%p685_p4)
}
 0x408   :  { %535 = dma.vmem_to_hbm [thread:$0]  %s533_s27, 128, %s819_s5, [#allocation4]  }
 0x409   :  { %697 = dma.done.wait [#allocation4], 128  }
 0x40a   :  { %698 = vsyncadd [#allocation4], 4294967168 }
 0x40b   :  { %539 = vsyncpa [#allocation4], 1 }

</bundles_post_ra>
